<compile_context>
chip_gen: v7x
topology: tpu7x:2x2x1
jax: 0.10.0
libtpu: 0.0.40
codegen_flags: <defaults>
</compile_context>

<pallas_src>
import functools

import jax
import jax.numpy as jnp
from jax.experimental import pallas as pl
from jax.experimental.pallas import tpu as pltpu


def _cdiv(a, b):
    return (a + b - 1) // b


def _round_up(n, m):
    return ((n + m - 1) // m) * m


def _layer_norm(h, gamma, beta, eps=1e-5):
    # E[h^2] - mu^2 form: the two row reductions are independent (pipeline
    # through the XLU).  Statistics are kept in f32 even on the bf16 path.
    n = h.shape[-1]
    inv_n = 1.0 / n
    s1 = jnp.sum(h, axis=-1, keepdims=True)
    s2 = jnp.sum(h * h, axis=-1, keepdims=True)
    mu = s1 * inv_n
    var = jnp.maximum(s2 * inv_n - mu * mu, 0.0)
    return (h - mu) * jax.lax.rsqrt(var + eps) * gamma + beta


def _make_actor_kernel(max_action, layer_norm):
    if layer_norm:
        def kernel(x_ref, w1_ref, b1_ref, g1_ref, be1_ref,
                   w2_ref, b2_ref, g2_ref, be2_ref,
                   w3_ref, b3_ref, o_ref):
            wdt = w1_ref.dtype                       # f32 or bf16 weights
            x = x_ref[...].astype(wdt)
            # Layer 1: Linear(state_dim -> 400) + bias, LayerNorm, tanh.
            h1 = jnp.dot(x, w1_ref[...], preferred_element_type=jnp.float32)
            h1 = h1 + b1_ref[...]
            h1 = jnp.tanh(_layer_norm(h1, g1_ref[...], be1_ref[...]))
            # Layer 2: Linear(400 -> 300) + bias, LayerNorm, tanh.
            h2 = jnp.dot(h1.astype(wdt), w2_ref[...],
                         preferred_element_type=jnp.float32)
            h2 = h2 + b2_ref[...]
            h2 = jnp.tanh(_layer_norm(h2, g2_ref[...], be2_ref[...]))
            # Layer 3: Linear(300 -> action_dim, lane-padded to 128), scaled tanh.
            h3 = jnp.dot(h2.astype(wdt), w3_ref[...],
                         preferred_element_type=jnp.float32) + b3_ref[...]
            o_ref[...] = (max_action * jnp.tanh(h3)).astype(o_ref.dtype)
    else:
        def kernel(x_ref, w1_ref, b1_ref, w2_ref, b2_ref, w3_ref, b3_ref, o_ref):
            wdt = w1_ref.dtype
            x = x_ref[...].astype(wdt)
            h1 = jnp.tanh(
                jnp.dot(x, w1_ref[...], preferred_element_type=jnp.float32)
                + b1_ref[...])
            h2 = jnp.tanh(
                jnp.dot(h1.astype(wdt), w2_ref[...],
                        preferred_element_type=jnp.float32) + b2_ref[...])
            h3 = jnp.dot(h2.astype(wdt), w3_ref[...],
                         preferred_element_type=jnp.float32) + b3_ref[...]
            o_ref[...] = (max_action * jnp.tanh(h3)).astype(o_ref.dtype)
    return kernel


def prepare_actor_params(params, weight_dtype=jnp.float32):
    """One-time layout prep.

    Weights -> [in, out] (optionally bf16), 1-D params -> [1, N] (kept f32),
    layer-3 weight / bias zero-padded to a lane-dense 128-wide action dim.
    """
    action_dim = params["w3"].shape[0]
    out_pad = _round_up(action_dim, 128)
    w3_t = jnp.pad(params["w3"].T, ((0, 0), (0, out_pad - action_dim)))
    b3 = jnp.pad(params["b3"], ((0, out_pad - action_dim),))
    f32 = jnp.float32
    return {
        "w1_t": params["w1"].T.astype(weight_dtype),
        "b1": params["b1"].reshape(1, -1).astype(f32),
        "w2_t": params["w2"].T.astype(weight_dtype),
        "b2": params["b2"].reshape(1, -1).astype(f32),
        "w3_t": w3_t.astype(weight_dtype),
        "b3": b3.reshape(1, -1).astype(f32),
        "g1": params["g1"].reshape(1, -1).astype(f32),
        "be1": params["be1"].reshape(1, -1).astype(f32),
        "g2": params["g2"].reshape(1, -1).astype(f32),
        "be2": params["be2"].reshape(1, -1).astype(f32),
    }


@functools.partial(jax.jit,
                   static_argnames=("max_action", "action_dim", "layer_norm",
                                    "tile_b"))
def actor_forward(x, prepared, max_action, action_dim, layer_norm=True,
                  tile_b=512):
    """x: [B, state_dim] f32.  prepared: output of prepare_actor_params."""
    B, state_dim = x.shape
    out_pad = prepared["w3_t"].shape[1]          # lane-dense (>= 128) action dim

    # Adaptive batch tiling: bound padding to <8 rows per tile, aim for
    # tile <= tile_b, and give v7x at least 2 grid steps to split across TCs.
    desired = max(8, int(tile_b))
    n_tiles = _cdiv(B, desired)
    if B >= 16:
        n_tiles = max(n_tiles, 2)
    tile = min(_round_up(_cdiv(B, n_tiles), 8), _round_up(B, 8))
    n_tiles = _cdiv(B, tile)
    Bp = n_tiles * tile
    if Bp != B:
        x = jnp.pad(x, ((0, Bp - B), (0, 0)))

    if layer_norm:
        resident_args = (prepared["w1_t"], prepared["b1"], prepared["g1"],
                         prepared["be1"],
                         prepared["w2_t"], prepared["b2"], prepared["g2"],
                         prepared["be2"],
                         prepared["w3_t"], prepared["b3"])
    else:
        resident_args = (prepared["w1_t"], prepared["b1"],
                         prepared["w2_t"], prepared["b2"],
                         prepared["w3_t"], prepared["b3"])

    x_spec = pl.BlockSpec((tile, state_dim), lambda i: (i, 0))
    o_spec = pl.BlockSpec((tile, out_pad), lambda i: (i, 0))
    # Full-array blocks with a constant index map -> fetched once, resident in
    # VMEM across every batch tile.
    resident_specs = [pl.BlockSpec(a.shape, lambda i: (0, 0))
                      for a in resident_args]

    out = pl.pallas_call(
        _make_actor_kernel(float(max_action), layer_norm),
        out_shape=jax.ShapeDtypeStruct((Bp, out_pad), x.dtype),
        grid=(n_tiles,),
        in_specs=[x_spec] + resident_specs,
        out_specs=o_spec,
        compiler_params=pltpu.CompilerParams(
            dimension_semantics=("parallel",)),
    )(x, *resident_args)

    return out[:B, :action_dim]


def init_actor_params(key, state_dim, action_dim):
    """Deterministic PyTorch-style (uniform +/- 1/sqrt(fan_in)) init."""
    ks = jax.random.split(key, 6)

    def lin(kw, kb, fan_in, fan_out):
        bound = 1.0 / jnp.sqrt(fan_in)
        w = jax.random.uniform(kw, (fan_out, fan_in), jnp.float32, -bound, bound)
        b = jax.random.uniform(kb, (fan_out,), jnp.float32, -bound, bound)
        return w, b

    w1, b1 = lin(ks[0], ks[1], state_dim, 400)
    w2, b2 = lin(ks[2], ks[3], 400, 300)
    w3, b3 = lin(ks[4], ks[5], 300, action_dim)
    return {
        "w1": w1, "b1": b1,
        "w2": w2, "b2": b2,
        "w3": w3, "b3": b3,
        # LayerNorm affine params (PyTorch default init: ones / zeros).
        "g1": jnp.ones((400,), jnp.float32), "be1": jnp.zeros((400,), jnp.float32),
        "g2": jnp.ones((300,), jnp.float32), "be2": jnp.zeros((300,), jnp.float32),
    }


def actor_forward_ref(x, params, max_action, layer_norm=True):
    """Pure-JAX reference matching the PyTorch forward."""
    def ln(h, g, b, eps=1e-5):
        mu = jnp.mean(h, axis=-1, keepdims=True)
        var = jnp.mean((h - mu) ** 2, axis=-1, keepdims=True)
        return (h - mu) / jnp.sqrt(var + eps) * g + b

    h1 = x @ params["w1"].T + params["b1"]
    if layer_norm:
        h1 = ln(h1, params["g1"], params["be1"])
    h1 = jnp.tanh(h1)
    h2 = h1 @ params["w2"].T + params["b2"]
    if layer_norm:
        h2 = ln(h2, params["g2"], params["be2"])
    h2 = jnp.tanh(h2)
    h3 = h2 @ params["w3"].T + params["b3"]
    return max_action * jnp.tanh(h3)


if __name__ == "__main__":
    state_dim, action_dim, max_action = 8, 4, 2.0
    batch = 2

    key = jax.random.PRNGKey(0)
    kx, kp = jax.random.split(key)
    params = init_actor_params(kp, state_dim, action_dim)
    prepared = prepare_actor_params(params)          # one-time layout prep (f32)
    x = jax.random.normal(kx, (batch, state_dim), jnp.float32)

    # LayerNorm path (args.layer_norm = True), f32 weights.
    out_ln = jax.block_until_ready(
        actor_forward(x, prepared, max_action, action_dim, layer_norm=True))
    ref_ln = actor_forward_ref(x, params, max_action, layer_norm=True)
    assert out_ln.shape == (batch, action_dim)
    assert jnp.allclose(out_ln, ref_ln, atol=1e-4, rtol=1e-4)

    # Plain path (args.layer_norm = False), f32 weights.
    out_nl = jax.block_until_ready(
        actor_forward(x, prepared, max_action, action_dim, layer_norm=False))
    ref_nl = actor_forward_ref(x, params, max_action, layer_norm=False)
    assert out_nl.shape == (batch, action_dim)
    assert jnp.allclose(out_nl, ref_nl, atol=1e-4, rtol=1e-4)

    # Optional bf16-weight path (MXU-native), looser tolerance; also exercises
    # multi-tile adaptive batching and the lane-dense padded output.
    batch2 = 37
    x2 = jax.random.normal(jax.random.PRNGKey(1), (batch2, state_dim), jnp.float32)
    prepared_bf16 = prepare_actor_params(params, weight_dtype=jnp.bfloat16)
    out_bf = jax.block_until_ready(
        actor_forward(x2, prepared_bf16, max_action, action_dim,
                      layer_norm=True, tile_b=512))
    ref_bf = actor_forward_ref(x2, params, max_action, layer_norm=True)
    assert out_bf.shape == (batch2, action_dim)
    assert jnp.allclose(out_bf, ref_bf, atol=5e-2, rtol=5e-2)

    print("KERNEL_OK")
</pallas_src>

<mosaic_0001>
module attributes {stable_mosaic.version = 11 : i64} {
  func.func @kernel(%arg0: i32, %arg1: memref<8x8xf32, #tpu.memory_space<vmem>>, %arg2: memref<8x400xf32, #tpu.memory_space<vmem>>, %arg3: memref<1x400xf32, #tpu.memory_space<vmem>>, %arg4: memref<1x400xf32, #tpu.memory_space<vmem>>, %arg5: memref<1x400xf32, #tpu.memory_space<vmem>>, %arg6: memref<400x300xf32, #tpu.memory_space<vmem>>, %arg7: memref<1x300xf32, #tpu.memory_space<vmem>>, %arg8: memref<1x300xf32, #tpu.memory_space<vmem>>, %arg9: memref<1x300xf32, #tpu.memory_space<vmem>>, %arg10: memref<300x128xf32, #tpu.memory_space<vmem>>, %arg11: memref<1x128xf32, #tpu.memory_space<vmem>>, %arg12: memref<8x128xf32, #tpu.memory_space<vmem>>) attributes {dimension_semantics = [#tpu.dimension_semantics<parallel>], iteration_bounds = array<i64: 1>, scalar_prefetch = 0 : i64, scratch_operands = 0 : i64, tpu.core_type = #tpu.core_type<tc>, window_params = [{transform_indices = @transform_0, window_bounds = array<i64: 8, 8>}, {pipeline_mode = #tpu.pipeline_mode<synchronous>, transform_indices = @transform_1, window_bounds = array<i64: 8, 400>}, {pipeline_mode = #tpu.pipeline_mode<synchronous>, transform_indices = @transform_2, window_bounds = array<i64: 1, 400>}, {pipeline_mode = #tpu.pipeline_mode<synchronous>, transform_indices = @transform_3, window_bounds = array<i64: 1, 400>}, {pipeline_mode = #tpu.pipeline_mode<synchronous>, transform_indices = @transform_4, window_bounds = array<i64: 1, 400>}, {pipeline_mode = #tpu.pipeline_mode<synchronous>, transform_indices = @transform_5, window_bounds = array<i64: 400, 300>}, {pipeline_mode = #tpu.pipeline_mode<synchronous>, transform_indices = @transform_6, window_bounds = array<i64: 1, 300>}, {pipeline_mode = #tpu.pipeline_mode<synchronous>, transform_indices = @transform_7, window_bounds = array<i64: 1, 300>}, {pipeline_mode = #tpu.pipeline_mode<synchronous>, transform_indices = @transform_8, window_bounds = array<i64: 1, 300>}, {pipeline_mode = #tpu.pipeline_mode<synchronous>, transform_indices = @transform_9, window_bounds = array<i64: 300, 128>}, {pipeline_mode = #tpu.pipeline_mode<synchronous>, transform_indices = @transform_10, window_bounds = array<i64: 1, 128>}, {transform_indices = @transform_11, window_bounds = array<i64: 8, 128>}]} {
    %c0 = arith.constant 0 : index
    %c0_0 = arith.constant 0 : index
    %0 = vector.load %arg1[%c0, %c0_0] : memref<8x8xf32, #tpu.memory_space<vmem>>, vector<8x8xf32>
    %c0_1 = arith.constant 0 : index
    %c0_2 = arith.constant 0 : index
    %1 = vector.load %arg2[%c0_1, %c0_2] : memref<8x400xf32, #tpu.memory_space<vmem>>, vector<8x400xf32>
    %cst = arith.constant dense<0.000000e+00> : vector<8x400xf32>
    %2 = tpu.matmul %0, %1, %cst {dimension_numbers = #tpu.dot_dimension_numbers<[1], [0], [0], [1], [0, 0, 1, 1], [], []>} : vector<8x8xf32>, vector<8x400xf32>, vector<8x400xf32> -> vector<8x400xf32>
    %c0_3 = arith.constant 0 : index
    %c0_4 = arith.constant 0 : index
    %3 = vector.load %arg3[%c0_3, %c0_4] : memref<1x400xf32, #tpu.memory_space<vmem>>, vector<1x400xf32>
    %4 = vector.broadcast %3 : vector<1x400xf32> to vector<8x400xf32>
    %5 = arith.addf %2, %4 : vector<8x400xf32>
    %c0_5 = arith.constant 0 : index
    %c0_6 = arith.constant 0 : index
    %6 = vector.load %arg4[%c0_5, %c0_6] : memref<1x400xf32, #tpu.memory_space<vmem>>, vector<1x400xf32>
    %c0_7 = arith.constant 0 : index
    %c0_8 = arith.constant 0 : index
    %7 = vector.load %arg5[%c0_7, %c0_8] : memref<1x400xf32, #tpu.memory_space<vmem>>, vector<1x400xf32>
    %cst_9 = arith.constant dense<0.000000e+00> : vector<8xf32>
    %8 = vector.multi_reduction <add>, %5, %cst_9 [1] : vector<8x400xf32> to vector<8xf32>
    %9 = vector.shape_cast %8 : vector<8xf32> to vector<8x1xf32>
    %10 = arith.mulf %5, %5 : vector<8x400xf32>
    %cst_10 = arith.constant dense<0.000000e+00> : vector<8xf32>
    %11 = vector.multi_reduction <add>, %10, %cst_10 [1] : vector<8x400xf32> to vector<8xf32>
    %12 = vector.shape_cast %11 : vector<8xf32> to vector<8x1xf32>
    %cst_11 = arith.constant 2.500000e-03 : f32
    %13 = vector.broadcast %cst_11 : f32 to vector<8x1xf32>
    %14 = arith.mulf %9, %13 : vector<8x1xf32>
    %cst_12 = arith.constant 2.500000e-03 : f32
    %15 = vector.broadcast %cst_12 : f32 to vector<8x1xf32>
    %16 = arith.mulf %12, %15 : vector<8x1xf32>
    %17 = arith.mulf %14, %14 : vector<8x1xf32>
    %18 = arith.subf %16, %17 : vector<8x1xf32>
    %cst_13 = arith.constant 0.000000e+00 : f32
    %19 = vector.broadcast %cst_13 : f32 to vector<8x1xf32>
    %20 = arith.maximumf %18, %19 : vector<8x1xf32>
    %21 = vector.broadcast %14 : vector<8x1xf32> to vector<8x400xf32>
    %22 = arith.subf %5, %21 : vector<8x400xf32>
    %cst_14 = arith.constant 9.99999974E-6 : f32
    %23 = vector.broadcast %cst_14 : f32 to vector<8x1xf32>
    %24 = arith.addf %20, %23 : vector<8x1xf32>
    %25 = math.rsqrt %24 : vector<8x1xf32>
    %26 = vector.broadcast %25 : vector<8x1xf32> to vector<8x400xf32>
    %27 = arith.mulf %22, %26 : vector<8x400xf32>
    %28 = vector.broadcast %6 : vector<1x400xf32> to vector<8x400xf32>
    %29 = arith.mulf %27, %28 : vector<8x400xf32>
    %30 = vector.broadcast %7 : vector<1x400xf32> to vector<8x400xf32>
    %31 = arith.addf %29, %30 : vector<8x400xf32>
    %32 = math.tanh %31 : vector<8x400xf32>
    %c0_15 = arith.constant 0 : index
    %c0_16 = arith.constant 0 : index
    %33 = vector.load %arg6[%c0_15, %c0_16] : memref<400x300xf32, #tpu.memory_space<vmem>>, vector<400x300xf32>
    %cst_17 = arith.constant dense<0.000000e+00> : vector<8x300xf32>
    %34 = tpu.matmul %32, %33, %cst_17 {dimension_numbers = #tpu.dot_dimension_numbers<[1], [0], [0], [1], [0, 0, 1, 1], [], []>} : vector<8x400xf32>, vector<400x300xf32>, vector<8x300xf32> -> vector<8x300xf32>
    %c0_18 = arith.constant 0 : index
    %c0_19 = arith.constant 0 : index
    %35 = vector.load %arg7[%c0_18, %c0_19] : memref<1x300xf32, #tpu.memory_space<vmem>>, vector<1x300xf32>
    %36 = vector.broadcast %35 : vector<1x300xf32> to vector<8x300xf32>
    %37 = arith.addf %34, %36 : vector<8x300xf32>
    %c0_20 = arith.constant 0 : index
    %c0_21 = arith.constant 0 : index
    %38 = vector.load %arg8[%c0_20, %c0_21] : memref<1x300xf32, #tpu.memory_space<vmem>>, vector<1x300xf32>
    %c0_22 = arith.constant 0 : index
    %c0_23 = arith.constant 0 : index
    %39 = vector.load %arg9[%c0_22, %c0_23] : memref<1x300xf32, #tpu.memory_space<vmem>>, vector<1x300xf32>
    %cst_24 = arith.constant dense<0.000000e+00> : vector<8xf32>
    %40 = vector.multi_reduction <add>, %37, %cst_24 [1] : vector<8x300xf32> to vector<8xf32>
    %41 = vector.shape_cast %40 : vector<8xf32> to vector<8x1xf32>
    %42 = arith.mulf %37, %37 : vector<8x300xf32>
    %cst_25 = arith.constant dense<0.000000e+00> : vector<8xf32>
    %43 = vector.multi_reduction <add>, %42, %cst_25 [1] : vector<8x300xf32> to vector<8xf32>
    %44 = vector.shape_cast %43 : vector<8xf32> to vector<8x1xf32>
    %cst_26 = arith.constant 0.00333333341 : f32
    %45 = vector.broadcast %cst_26 : f32 to vector<8x1xf32>
    %46 = arith.mulf %41, %45 : vector<8x1xf32>
    %cst_27 = arith.constant 0.00333333341 : f32
    %47 = vector.broadcast %cst_27 : f32 to vector<8x1xf32>
    %48 = arith.mulf %44, %47 : vector<8x1xf32>
    %49 = arith.mulf %46, %46 : vector<8x1xf32>
    %50 = arith.subf %48, %49 : vector<8x1xf32>
    %cst_28 = arith.constant 0.000000e+00 : f32
    %51 = vector.broadcast %cst_28 : f32 to vector<8x1xf32>
    %52 = arith.maximumf %50, %51 : vector<8x1xf32>
    %53 = vector.broadcast %46 : vector<8x1xf32> to vector<8x300xf32>
    %54 = arith.subf %37, %53 : vector<8x300xf32>
    %cst_29 = arith.constant 9.99999974E-6 : f32
    %55 = vector.broadcast %cst_29 : f32 to vector<8x1xf32>
    %56 = arith.addf %52, %55 : vector<8x1xf32>
    %57 = math.rsqrt %56 : vector<8x1xf32>
    %58 = vector.broadcast %57 : vector<8x1xf32> to vector<8x300xf32>
    %59 = arith.mulf %54, %58 : vector<8x300xf32>
    %60 = vector.broadcast %38 : vector<1x300xf32> to vector<8x300xf32>
    %61 = arith.mulf %59, %60 : vector<8x300xf32>
    %62 = vector.broadcast %39 : vector<1x300xf32> to vector<8x300xf32>
    %63 = arith.addf %61, %62 : vector<8x300xf32>
    %64 = math.tanh %63 : vector<8x300xf32>
    %c0_30 = arith.constant 0 : index
    %c0_31 = arith.constant 0 : index
    %65 = vector.load %arg10[%c0_30, %c0_31] : memref<300x128xf32, #tpu.memory_space<vmem>>, vector<300x128xf32>
    %cst_32 = arith.constant dense<0.000000e+00> : vector<8x128xf32>
    %66 = tpu.matmul %64, %65, %cst_32 {dimension_numbers = #tpu.dot_dimension_numbers<[1], [0], [0], [1], [0, 0, 1, 1], [], []>} : vector<8x300xf32>, vector<300x128xf32>, vector<8x128xf32> -> vector<8x128xf32>
    %c0_33 = arith.constant 0 : index
    %c0_34 = arith.constant 0 : index
    %67 = vector.load %arg11[%c0_33, %c0_34] : memref<1x128xf32, #tpu.memory_space<vmem>>, vector<1x128xf32>
    %68 = vector.broadcast %67 : vector<1x128xf32> to vector<8x128xf32>
    %69 = arith.addf %66, %68 : vector<8x128xf32>
    %70 = math.tanh %69 : vector<8x128xf32>
    %cst_35 = arith.constant 2.000000e+00 : f32
    %71 = vector.broadcast %cst_35 : f32 to vector<8x128xf32>
    %72 = arith.mulf %71, %70 : vector<8x128xf32>
    %c0_36 = arith.constant 0 : index
    %c0_37 = arith.constant 0 : index
    %73 = vector.load %arg12[%c0_36, %c0_37] : memref<8x128xf32, #tpu.memory_space<vmem>>, vector<8x128xf32>
    tpu.vector_store %arg12[%c0_36, %c0_37], %72 {strides = array<i32>} : memref<8x128xf32, #tpu.memory_space<vmem>>, vector<8x128xf32>,
    return
  }
  func.func @transform_0(%arg0: i32) -> (i32, i32) {
    %c0_i32 = arith.constant 0 : i32
    %c0_i32_0 = arith.constant 0 : i32
    return %arg0, %c0_i32 : i32, i32
  }
  func.func @transform_1(%arg0: i32) -> (i32, i32) {
    %c0_i32 = arith.constant 0 : i32
    %c0_i32_0 = arith.constant 0 : i32
    %c0_i32_1 = arith.constant 0 : i32
    return %c0_i32, %c0_i32_0 : i32, i32
  }
  func.func @transform_2(%arg0: i32) -> (i32, i32) {
    %c0_i32 = arith.constant 0 : i32
    %c0_i32_0 = arith.constant 0 : i32
    %c0_i32_1 = arith.constant 0 : i32
    return %c0_i32, %c0_i32_0 : i32, i32
  }
  func.func @transform_3(%arg0: i32) -> (i32, i32) {
    %c0_i32 = arith.constant 0 : i32
    %c0_i32_0 = arith.constant 0 : i32
    %c0_i32_1 = arith.constant 0 : i32
    return %c0_i32, %c0_i32_0 : i32, i32
  }
  func.func @transform_4(%arg0: i32) -> (i32, i32) {
    %c0_i32 = arith.constant 0 : i32
    %c0_i32_0 = arith.constant 0 : i32
    %c0_i32_1 = arith.constant 0 : i32
    return %c0_i32, %c0_i32_0 : i32, i32
  }
  func.func @transform_5(%arg0: i32) -> (i32, i32) {
    %c0_i32 = arith.constant 0 : i32
    %c0_i32_0 = arith.constant 0 : i32
    %c0_i32_1 = arith.constant 0 : i32
    return %c0_i32, %c0_i32_0 : i32, i32
  }
  func.func @transform_6(%arg0: i32) -> (i32, i32) {
    %c0_i32 = arith.constant 0 : i32
    %c0_i32_0 = arith.constant 0 : i32
    %c0_i32_1 = arith.constant 0 : i32
    return %c0_i32, %c0_i32_0 : i32, i32
  }
  func.func @transform_7(%arg0: i32) -> (i32, i32) {
    %c0_i32 = arith.constant 0 : i32
    %c0_i32_0 = arith.constant 0 : i32
    %c0_i32_1 = arith.constant 0 : i32
    return %c0_i32, %c0_i32_0 : i32, i32
  }
  func.func @transform_8(%arg0: i32) -> (i32, i32) {
    %c0_i32 = arith.constant 0 : i32
    %c0_i32_0 = arith.constant 0 : i32
    %c0_i32_1 = arith.constant 0 : i32
    return %c0_i32, %c0_i32_0 : i32, i32
  }
  func.func @transform_9(%arg0: i32) -> (i32, i32) {
    %c0_i32 = arith.constant 0 : i32
    %c0_i32_0 = arith.constant 0 : i32
    %c0_i32_1 = arith.constant 0 : i32
    return %c0_i32, %c0_i32_0 : i32, i32
  }
  func.func @transform_10(%arg0: i32) -> (i32, i32) {
    %c0_i32 = arith.constant 0 : i32
    %c0_i32_0 = arith.constant 0 : i32
    %c0_i32_1 = arith.constant 0 : i32
    return %c0_i32, %c0_i32_0 : i32, i32
  }
  func.func @transform_11(%arg0: i32) -> (i32, i32) {
    %c0_i32 = arith.constant 0 : i32
    %c0_i32_0 = arith.constant 0 : i32
    return %arg0, %c0_i32 : i32, i32
  }
}

</mosaic_0001>

<bundles_post_ra>
// kernel: actor_forward.1
= control target key start
LH: loop header
LB: loop body
LE: loop exit
PB: predicated region body
PF: predicated region fallthrough
CT: control target
= control target key end

     0   :  { %16 = vsyncpa [#allocation3], 0  ;;  %s1868_s0 = inlined_call_operand.vmem [shape: f32[8,8], index: 0, kind: input, shape index: {}]   ;;  %s1869_s1 = inlined_call_operand.vmem [shape: f32[8,400], index: 1, kind: input, shape index: {}]   ;;  %s1870_s2 = inlined_call_operand.vmem [shape: f32[1,400], index: 2, kind: input, shape index: {}]   ;;  %s1871_s3 = inlined_call_operand.vmem [shape: f32[1,400], index: 3, kind: input, shape index: {}]   ;;  %s1872_s4 = inlined_call_operand.hbm [shape: f32[1,400], index: 4, kind: input, shape index: {}]   ;;  %s1873_s5 = inlined_call_operand.hbm [shape: f32[400,300], index: 5, kind: input, shape index: {}]   ;;  %s1874_s6 = inlined_call_operand.hbm [shape: f32[1,300], index: 6, kind: input, shape index: {}]   ;;  %s1875_s7 = inlined_call_operand.hbm [shape: f32[1,300], index: 7, kind: input, shape index: {}]   ;;  %s1876_s8 = inlined_call_operand.hbm [shape: f32[1,300], index: 8, kind: input, shape index: {}]   ;;  %s1877_s9 = inlined_call_operand.hbm [shape: f32[300,128], index: 9, kind: input, shape index: {}]   ;;  %s1878_s10 = inlined_call_operand.vmem [shape: f32[1,128], index: 10, kind: input, shape index: {}]   ;;  %s1879_s11 = inlined_call_operand.vmem [shape: f32[8,128], index: 11, kind: output, shape index: {}]  }
   0x1   :  { %17 = vsyncpa [#allocation5], 0 }
   0x2   :  { %18 = vsyncpa [#allocation8], 0 }
   0x3   :  { %19 = vsyncpa [#allocation11], 0  ;;  %s1576_s17 = smov [#allocation4]   ;;  %s1436_s21 = scalar_lea.hbm %s1873_s5, 19200 }
   0x4   :  { %s43_s18 = sshll.u32 %s1576_s17, 4  ;;  %p1437_p0 = scmp.ne.s32.totalorder %s1873_s5, %s1436_s21  ;;  %s44_s18 = int_to_ptr.vmem [resolvable:$true] %s43_s18 }
   0x5   :  { %p1440_p1 = scmp.lt.u32.totalorder %s1436_s21, %s1873_s5 }
   0x7   :  { %p1442_p2 = pnand %p1440_p1, %p1437_p0 }
   0x9   :  { %1445 = shalt.err (!%p1442_p2)
}
   0xa   :  { %s1446_s26 = scalar_lea.vmem %s44_s18, 19200  ;;  %p1451_p4 = scmp.lt.s32.totalorder %s44_s18, %s44_s18 }
   0xb   :  { %p1447_p3 = scmp.ne.s32.totalorder %s44_s18, %s1446_s26  ;;  %p1452_p5 = scmp.lt.s32.totalorder %s1446_s26, %s1446_s26 }
   0xd   :  { %p1453_p6 = por %p1452_p5, %p1451_p4 }
   0xf   :  { %p1454_p7 = pnand %p1453_p6, %p1447_p3 }
  0x11   :  { %1457 = shalt.err (!%p1454_p7)
}
  0x12   :  { %s1577_s27 = smov 384   ;;  %s1578_s28 = smov 24  }
  0x13   :  { %49 = dma.hbm_to_vmem [thread:$0]  %s1873_s5, 19200, %s44_s18, [#allocation5], %s1577_s27, %s1577_s27, %s1578_s28  }
  0x14   :  { %s1579_s12 = smov [#allocation7]   ;;  %s1580_s14 = smov [#allocation2]  }
  0x15   :  { %s66_s13 = sshll.u32 %s1579_s12, 4  ;;  %s34_s15 = sshll.u32 %s1580_s14, 4  ;;  %s67_s13 = int_to_ptr.vmem [resolvable:$true] %s66_s13  ;;  %s35_s15 = int_to_ptr.vmem [resolvable:$true] %s34_s15 }
  0x16   :  { %s1458_s19 = scalar_lea.hbm %s1875_s7, 48 }
  0x17   :  { %p1459_p8 = scmp.ne.s32.totalorder %s1875_s7, %s1458_s19  ;;  %p1462_p9 = scmp.lt.u32.totalorder %s1458_s19, %s1875_s7 }
  0x19   :  { %p1464_p10 = pnand %p1462_p9, %p1459_p8 }
  0x1b   :  { %1467 = shalt.err (!%p1464_p10)
}
  0x1c   :  { %s1468_s5 = scalar_lea.vmem %s67_s13, 48  ;;  %s1472_s18 = scalar_lea.vmem %s67_s13, 64 }
  0x1d   :  { %p1469_p11 = scmp.ne.s32.totalorder %s67_s13, %s1468_s5  ;;  %p1473_p12 = scmp.lt.s32.totalorder %s67_s13, %s67_s13 }
  0x1e   :  { %p1474_p13 = scmp.lt.s32.totalorder %s1472_s18, %s1468_s5 }
  0x20   :  { %p1475_p0 = por %p1474_p13, %p1473_p12 }
  0x22   :  { %p1476_p1 = pnand %p1475_p0, %p1469_p11 }
  0x24   :  { %1479 = shalt.err (!%p1476_p1)
}
  0x25   :  { %69 = dma.hbm_to_vmem [thread:$0]  %s1875_s7, 48, %s67_s13, [#allocation8]  }
  0x26   :  { %s1480_s28 = scalar_lea.hbm %s1872_s4, 64 }
  0x27   :  { %p1481_p2 = scmp.ne.s32.totalorder %s1872_s4, %s1480_s28  ;;  %p1484_p3 = scmp.lt.u32.totalorder %s1480_s28, %s1872_s4 }
  0x29   :  { %p1486_p4 = pnand %p1484_p3, %p1481_p2 }
  0x2b   :  { %1489 = shalt.err (!%p1486_p4)
}
  0x2c   :  { %s1490_s16 = scalar_lea.vmem %s35_s15, 64  ;;  %p1495_p6 = scmp.lt.s32.totalorder %s35_s15, %s35_s15 }
  0x2d   :  { %p1491_p5 = scmp.ne.s32.totalorder %s35_s15, %s1490_s16  ;;  %p1496_p7 = scmp.lt.s32.totalorder %s1490_s16, %s1490_s16 }
  0x2f   :  { %p1497_p8 = por %p1496_p7, %p1495_p6 }
  0x31   :  { %p1498_p9 = pnand %p1497_p8, %p1491_p5 }
  0x33   :  { %1501 = shalt.err (!%p1498_p9)
}
  0x34   :  { %37 = dma.hbm_to_vmem [thread:$0]  %s1872_s4, 64, %s35_s15, [#allocation3]  }
  0x35   :  { %s1581_s17 = smov [#allocation6]   ;;  %s1582_s20 = smov [#allocation9]  }
  0x36   :  { %s56_s19 = sshll.u32 %s1581_s17, 4  ;;  %s76_s21 = sshll.u32 %s1582_s20, 4  ;;  %s57_s19 = int_to_ptr.vmem [resolvable:$true] %s56_s19  ;;  %s77_s21 = int_to_ptr.vmem [resolvable:$true] %s76_s21 }
  0x37   :  { %s1502_s5 = scalar_lea.hbm %s1874_s6, 48 }
  0x38   :  { %p1503_p10 = scmp.ne.s32.totalorder %s1874_s6, %s1502_s5  ;;  %p1506_p11 = scmp.lt.u32.totalorder %s1502_s5, %s1874_s6 }
  0x3a   :  { %p1508_p12 = pnand %p1506_p11, %p1503_p10 }
  0x3c   :  { %1511 = shalt.err (!%p1508_p12)
}
  0x3d   :  { %s1512_s4 = scalar_lea.vmem %s57_s19, 48  ;;  %s1516_s15 = scalar_lea.vmem %s57_s19, 64 }
  0x3e   :  { %p1513_p13 = scmp.ne.s32.totalorder %s57_s19, %s1512_s4  ;;  %p1517_p0 = scmp.lt.s32.totalorder %s57_s19, %s57_s19 }
  0x3f   :  { %p1518_p1 = scmp.lt.s32.totalorder %s1516_s15, %s1512_s4 }
  0x41   :  { %p1519_p2 = por %p1518_p1, %p1517_p0 }
  0x43   :  { %p1520_p3 = pnand %p1519_p2, %p1513_p13 }
  0x45   :  { %1523 = shalt.err (!%p1520_p3)
}
  0x46   :  { %59 = dma.hbm_to_vmem [thread:$0]  %s1874_s6, 48, %s57_s19, [#allocation5]  }
  0x47   :  { %s1524_s12 = scalar_lea.hbm %s1876_s8, 48 }
  0x48   :  { %p1525_p4 = scmp.ne.s32.totalorder %s1876_s8, %s1524_s12  ;;  %p1528_p5 = scmp.lt.u32.totalorder %s1524_s12, %s1876_s8 }
  0x4a   :  { %p1530_p6 = pnand %p1528_p5, %p1525_p4 }
  0x4c   :  { %1533 = shalt.err (!%p1530_p6)
}
  0x4d   :  { %s1534_s17 = scalar_lea.vmem %s77_s21, 48  ;;  %s1538_s20 = scalar_lea.vmem %s77_s21, 64 }
  0x4e   :  { %p1535_p7 = scmp.ne.s32.totalorder %s77_s21, %s1534_s17  ;;  %p1539_p8 = scmp.lt.s32.totalorder %s77_s21, %s77_s21 }
  0x4f   :  { %p1540_p9 = scmp.lt.s32.totalorder %s1538_s20, %s1534_s17 }
  0x51   :  { %p1541_p10 = por %p1540_p9, %p1539_p8 }
  0x53   :  { %p1542_p11 = pnand %p1541_p10, %p1535_p7 }
  0x55   :  { %1545 = shalt.err (!%p1542_p11)
}
  0x56   :  { %79 = dma.hbm_to_vmem [thread:$0]  %s1876_s8, 48, %s77_s21, [#allocation8]  }
  0x57   :  { %s1583_s22 = smov [#allocation10]   ;;  %s1546_s24 = scalar_lea.hbm %s1877_s9, 4864 }
  0x58   :  { %s85_s23 = sshll.u32 %s1583_s22, 4  ;;  %p1547_p12 = scmp.ne.s32.totalorder %s1877_s9, %s1546_s24  ;;  %s86_s23 = int_to_ptr.vmem [resolvable:$true] %s85_s23 }
  0x59   :  { %p1550_p13 = scmp.lt.u32.totalorder %s1546_s24, %s1877_s9 }
  0x5b   :  { %p1552_p0 = pnand %p1550_p13, %p1547_p12 }
  0x5d   :  { %1555 = shalt.err (!%p1552_p0)
}
  0x5e   :  { %s1556_s27 = scalar_lea.vmem %s86_s23, 4864  ;;  %p1561_p2 = scmp.lt.s32.totalorder %s86_s23, %s86_s23 }
  0x5f   :  { %p1557_p1 = scmp.ne.s32.totalorder %s86_s23, %s1556_s27  ;;  %p1562_p3 = scmp.lt.s32.totalorder %s1556_s27, %s1556_s27 }
  0x61   :  { %p1563_p4 = por %p1562_p3, %p1561_p2 }
  0x63   :  { %p1564_p5 = pnand %p1563_p4, %p1557_p1 }
  0x65   :  { %1567 = shalt.err (!%p1564_p5)
}
  0x66   :  { %s1584_s8 = smov 128   ;;  %s1585_s21 = smov 8  }
  0x67   :  { %91 = dma.hbm_to_vmem [thread:$0]  %s1877_s9, 4864, %s86_s23, [#allocation11], %s1584_s8, %s1584_s8, %s1585_s21  }
  0x68   :  { %1568 = dma.done.wait [#allocation3], 64  }
  0x69   :  { %1569 = vsyncadd [#allocation3], 4294967232 }
  0x6a   :  { %1570 = dma.done.wait [#allocation5], 19248  }
  0x6b   :  { %1571 = vsyncadd [#allocation5], 4294948048 }
  0x6c   :  { %1572 = dma.done.wait [#allocation8], 96  }
  0x6d   :  { %1573 = vsyncadd [#allocation8], 4294967200 }
  0x6e   :  { %1574 = dma.done.wait [#allocation11], 4864  }
  0x6f   :  { %1575 = vsyncadd [#allocation11], 4294962432  ;;  %v1586_v0 = vmov 0.0   ;;  %v114_v1 = vld [vmem:[%s1869_s1 + $0x8] sm:$0xff]  ;;  %v113_v2 = vld [vmem:[%s1869_s1] sm:$0xff]  ;;  %vm139_vm0 = vcmask 64512   ;;  %v119_v42 = vlaneseq }
  0x70   :  { %207 = vmatprep.mubr.f32.mxu1 %v1586_v0  ;;  %v112_v3 = vld [vmem:[%s1868_s0] sm:$0xff]  ;;  %143 = vmatprep.subr.mxu1 %v114_v1  ;;  %v116_v4 = vld [vmem:[%s1869_s1 + $0x18] sm:$0xff]  ;;  %v115_v5 = vld [vmem:[%s1869_s1 + $0x10] sm:$0xff]  ;;  %vm289_vm1 = vcmask 130048   ;;  %vm828_vm2 = vcmask 359424   ;;  %vm1588_vm3 = vmmov 0  }
  0x71   :  { %144 = vmatpush1.msra.mxu1 %v113_v2  ;;  %v374_v6 = vld [vmem:[#allocation4 + $0x8] sm:$0xff]  ;;  %v377_v7 = vld [vmem:[#allocation4 + $0x20] sm:$0xff]  ;;  %v376_v10 = vld [vmem:[#allocation4 + $0x18] sm:$0xff]  ;;  %v120_v43 = vshrl.u32 %v119_v42, 7  ;;  %vm943_vm4 = vcmask 1043456   ;;  %vm1589_vm5 = vmmov 1  }
  0x72   :  { %1098 = vmatmul.mubr.msk.f32.vlgmr.msra.gmra.mrb[0].mxu1 %vm139_vm0, %v112_v3  ;;  %214 = vmatprep.subr.mxu1 %v116_v4  ;;  %v373_v8 = vld [vmem:[#allocation4] sm:$0xff]  ;;  %v1197_v9 = vpack.c.bf16 %v377_v7, %v374_v6  ;;  %v380_v11 = vld [vmem:[#allocation4 + $0x38] sm:$0xff]  ;;  %v383_v12 = vld [vmem:[#allocation4 + $0x50] sm:$0xff] }
  0x73   :  { %215 = vmatpush1.msra.mxu1 %v115_v5  ;;  %278 = vmatprep.mubr.f32.mxu1 %v1586_v0  ;;  %v1199_v13 = vpack.c.bf16 %v376_v10, %v373_v8  ;;  %v1201_v14 = vpack.c.bf16 %v383_v12, %v380_v11  ;;  %v379_v15 = vld [vmem:[#allocation4 + $0x30] sm:$0xff]  ;;  %v382_v16 = vld [vmem:[#allocation4 + $0x48] sm:$0xff]  ;;  %v389_v18 = vld [vmem:[#allocation4 + $0x80] sm:$0xff]  ;;  %v1739_v44 = vsub.s32 0, %v120_v43  ;;  %v1744_v46 = vsub.s32 1, %v120_v43 }
  0x74   :  { %v386_v17 = vld [vmem:[#allocation4 + $0x68] sm:$0xff]  ;;  %1198 = vmatprep.subr.bf16.mxu0 %v1197_v9  ;;  %v1203_v19 = vpack.c.bf16 %v382_v16, %v379_v15  ;;  %v385_v21 = vld [vmem:[#allocation4 + $0x60] sm:$0xff]  ;;  %v388_v22 = vld [vmem:[#allocation4 + $0x78] sm:$0xff]  ;;  %v1747_v48 = vsub.s32 2, %v120_v43  ;;  %v1750_v50 = vsub.s32 3, %v120_v43 }
  0x75   :  { %1200 = vmatpush1.bf16.msra.mxu0 %v1199_v13  ;;  %v1205_v20 = vpack.c.bf16 %v389_v18, %v386_v17  ;;  %v392_v23 = vld [vmem:[#allocation4 + $0x98] sm:$0xff]  ;;  %v395_v24 = vld [vmem:[#allocation4 + $0xb0] sm:$0xff]  ;;  %v1207_v25 = vpack.c.bf16 %v388_v22, %v385_v21  ;;  %v394_v28 = vld [vmem:[#allocation4 + $0xa8] sm:$0xff] }
  0x76   :  { %1099 = vmatmul.mubr.msk.f32.vlgmr.msra.gmra.mrb[2].mxu1 %vm139_vm0, %v112_v3  ;;  %1202 = vmatprep.subr.bf16.mxu0 %v1201_v14  ;;  %v1209_v26 = vpack.c.bf16 %v395_v24, %v392_v23  ;;  %v391_v27 = vld [vmem:[#allocation4 + $0x90] sm:$0xff]  ;;  %v398_v29 = vld [vmem:[#allocation4 + $0xc8] sm:$0xff]  ;;  %v401_v30 = vld [vmem:[#allocation4 + $0xe0] sm:$0xff] }
  0x77   :  { %v1211_v31 = vpack.c.bf16 %v394_v28, %v391_v27  ;;  %v1213_v32 = vpack.c.bf16 %v401_v30, %v398_v29  ;;  %v397_v33 = vld [vmem:[#allocation4 + $0xc0] sm:$0xff]  ;;  %v400_v34 = vld [vmem:[#allocation4 + $0xd8] sm:$0xff]  ;;  %v407_v36 = vld [vmem:[#allocation4 + $0x110] sm:$0xff] }
  0x78   :  { %v404_v35 = vld [vmem:[#allocation4 + $0xf8] sm:$0xff]  ;;  %v1215_v37 = vpack.c.bf16 %v400_v34, %v397_v33  ;;  %v403_v39 = vld [vmem:[#allocation4 + $0xf0] sm:$0xff]  ;;  %v406_v40 = vld [vmem:[#allocation4 + $0x108] sm:$0xff] }
  0x79   :  { %1204 = vmatpush1.bf16.msra.mxu0 %v1203_v19  ;;  %v1217_v38 = vpack.c.bf16 %v407_v36, %v404_v35  ;;  %v1219_v41 = vpack.c.bf16 %v406_v40, %v403_v39  ;;  %v117_v45 = vld [vmem:[%s1870_s2] sm:$0xf]  ;;  %v410_v10 = vld [vmem:[#allocation4 + $0x128] sm:$0xff]  ;;  %v413_v11 = vld [vmem:[#allocation4 + $0x140] sm:$0xff] }
  0x7a   :  { %1206 = vmatprep.subr.bf16.mxu0 %v1205_v20  ;;  %v122_v47 = vrot.slane %v117_v45, %v1739_v44  ;;  %v126_v49 = vrot.slane %v117_v45, %v1744_v46  ;;  %v130_v54 = vrot.slane %v117_v45, %v1747_v48  ;;  %v134_v56 = vrot.slane %v117_v45, %v1750_v50  ;;  %v409_v13 = vld [vmem:[#allocation4 + $0x120] sm:$0xff]  ;;  %v412_v14 = vld [vmem:[#allocation4 + $0x138] sm:$0xff]  ;;  %v419_v17 = vld [vmem:[#allocation4 + $0x170] sm:$0xff] }
  0x7b   :  { %v1221_v12 = vpack.c.bf16 %v413_v11, %v410_v10  ;;  %v1223_v15 = vpack.c.bf16 %v412_v14, %v409_v13  ;;  %v416_v16 = vld [vmem:[#allocation4 + $0x158] sm:$0xff]  ;;  %v415_v19 = vld [vmem:[#allocation4 + $0x150] sm:$0xff]  ;;  %v418_v20 = vld [vmem:[#allocation4 + $0x168] sm:$0xff] }
  0x7c   :  { %v1225_v18 = vpack.c.bf16 %v419_v17, %v416_v16  ;;  %v1227_v21 = vpack.c.bf16 %v418_v20, %v415_v19  ;;  %v422_v22 = vld [vmem:[#allocation4 + $0x188] sm:$0xff]  ;;  %v425_v23 = vld [vmem:[#allocation4 + $0x1a0] sm:$0xff]  ;;  %v423_v24 = vld [vmem:[#allocation4 + $0x190] sm:$0xff] }
  0x7d   :  { %1208 = vmatpush1.bf16.msra.mxu0 %v1207_v25  ;;  %v1229_v25 = vpack.c.bf16 %v425_v23, %v422_v22  ;;  %v421_v27 = vld [vmem:[#allocation4 + $0x180] sm:$0xff]  ;;  %v424_v28 = vld [vmem:[#allocation4 + $0x198] sm:$0xff]  ;;  %v431_v35 = vld [vmem:[#allocation4 + $0x1d0] sm:$0xff] }
  0x7e   :  { %1210 = vmatprep.subr.bf16.mxu0 %v1209_v26  ;;  %v426_v26 = vld [vmem:[#allocation4 + $0x1a8] sm:$0xff]  ;;  %v1231_v30 = vpack.c.bf16 %v424_v28, %v421_v27  ;;  %v428_v34 = vld [vmem:[#allocation4 + $0x1b8] sm:$0xff]  ;;  %v429_v36 = vld [vmem:[#allocation4 + $0x1c0] sm:$0xff] }
  0x7f   :  { %v1297_v29 = vpack.c.bf16 %v426_v26, %v423_v24  ;;  %v427_v39 = vld [vmem:[#allocation4 + $0x1b0] sm:$0xff]  ;;  %v430_v40 = vld [vmem:[#allocation4 + $0x1c8] sm:$0xff]  ;;  %v381_v43 = vld [vmem:[#allocation4 + $0x40] sm:$0xff] }
  0x80   :  { %v1235_v42 = vpack.c.bf16 %v430_v40, %v427_v39  ;;  %v384_v45 = vld [vmem:[#allocation4 + $0x58] sm:$0xff]  ;;  %v449_v16 = vld [vmem:[#allocation4 + $0x260] sm:$0xff]  ;;  %v447_v17 = vld [vmem:[#allocation4 + $0x250] sm:$0xff] }
  0x81   :  { %1212 = vmatpush1.bf16.msra.mxu0 %v1211_v31  ;;  %v375_v31 = vld [vmem:[#allocation4 + $0x10] sm:$0xff]  ;;  %1298 = vmatprep.subr.bf16.mxu1 %v1297_v29  ;;  %v396_v13 = vld [vmem:[#allocation4 + $0xb8] sm:$0xff]  ;;  %v450_v19 = vld [vmem:[#allocation4 + $0x268] sm:$0xff] }
  0x82   :  { %1214 = vmatprep.subr.bf16.mxu0 %v1213_v32  ;;  %v378_v32 = vld [vmem:[#allocation4 + $0x28] sm:$0xff]  ;;  %v445_v20 = vld [vmem:[#allocation4 + $0x240] sm:$0xff]  ;;  %v1313_v22 = vpack.c.bf16 %v450_v19, %v447_v17  ;;  %v399_v24 = vld [vmem:[#allocation4 + $0xd0] sm:$0xff] }
  0x83   :  { %v1299_v33 = vpack.c.bf16 %v378_v32, %v375_v31  ;;  %v452_v26 = vld [vmem:[#allocation4 + $0x278] sm:$0xff]  ;;  %v455_v28 = vld [vmem:[#allocation4 + $0x290] sm:$0xff]  ;;  %v453_v29 = vld [vmem:[#allocation4 + $0x280] sm:$0xff] }
  0x84   :  { %v1249_v31 = vpack.c.bf16 %v455_v28, %v452_v26  ;;  %v461_v39 = vld [vmem:[#allocation4 + $0x2c0] sm:$0xff]  ;;  %vm1396_vm6 = vmpackc.low %vm943_vm4, %vm1589_vm5 }
  0x85   :  { %1216 = vmatpush1.bf16.msra.mxu0 %v1215_v37  ;;  %1300 = vmatpush3.bf16.msra.mxu1 %v1299_v33  ;;  %v1233_v37 = vpack.c.bf16 %v431_v35, %v428_v34  ;;  %v451_v33 = vld [vmem:[#allocation4 + $0x270] sm:$0xff]  ;;  %v454_v34 = vld [vmem:[#allocation4 + $0x288] sm:$0xff]  ;;  %v405_v35 = vld [vmem:[#allocation4 + $0x100] sm:$0xff] }
  0x86   :  { %1218 = vmatprep.subr.bf16.mxu0 %v1217_v38  ;;  %v432_v38 = vld [vmem:[#allocation4 + $0x1d8] sm:$0xff] }
  0x89   :  { %1220 = vmatpush1.bf16.msra.mxu0 %v1219_v41  ;;  %v1301_v41 = vpack.c.bf16 %v432_v38, %v429_v36  ;;  %v1251_v36 = vpack.c.bf16 %v454_v34, %v451_v33  ;;  %v458_v38 = vld [vmem:[#allocation4 + $0x2a8] sm:$0xff] }
  0x8a   :  { %1222 = vmatprep.subr.bf16.mxu0 %v1221_v12  ;;  %v393_v12 = vld [vmem:[#allocation4 + $0xa0] sm:$0xff] }
  0x8b   :  { %1302 = vmatprep.subr.bf16.mxu1 %v1301_v41  ;;  %v1311_v14 = vpack.c.bf16 %v396_v13, %v393_v12  ;;  %v1253_v41 = vpack.c.bf16 %v461_v39, %v458_v38  ;;  %v469_v38 = vld [vmem:[#allocation4 + $0x300] sm:$0xff]  ;;  %v472_v39 = vld [vmem:[#allocation4 + $0x318] sm:$0xff] }
  0x8d   :  { %1224 = vmatpush1.bf16.msra.mxu0 %v1223_v15  ;;  %v446_v15 = vld [vmem:[#allocation4 + $0x248] sm:$0xff] }
  0x8e   :  { %1226 = vmatprep.subr.bf16.mxu0 %v1225_v18  ;;  %v1245_v18 = vpack.c.bf16 %v449_v16, %v446_v15 }
  0x91   :  { %1228 = vmatpush1.bf16.msra.mxu0 %v1227_v21  ;;  %v448_v21 = vld [vmem:[#allocation4 + $0x258] sm:$0xff] }
  0x92   :  { %1230 = vmatprep.subr.bf16.mxu0 %v1229_v25  ;;  %v1247_v23 = vpack.c.bf16 %v448_v21, %v445_v20  ;;  %v402_v25 = vld [vmem:[#allocation4 + $0xe8] sm:$0xff]  ;;  %v1784_v20 = vld [vmem:[%s1871_s3] sm:$0xf] }
  0x93   :  { %v1315_v27 = vpack.c.bf16 %v402_v25, %v399_v24  ;;  %v1786_v21 = vld [vmem:[#allocation2] sm:$0xf] }
  0x95   :  { %1232 = vmatpush1.bf16.msra.mxu0 %v1231_v30  ;;  %v456_v30 = vld [vmem:[#allocation4 + $0x298] sm:$0xff] }
  0x96   :  { %1234 = vmatprep.subr.bf16.mxu0 %v1233_v37  ;;  %v1317_v32 = vpack.c.bf16 %v456_v30, %v453_v29  ;;  %v408_v37 = vld [vmem:[#allocation4 + $0x118] sm:$0xff]  ;;  %v348_v29 = vrot.slane %v1786_v21, %v1739_v44 }
  0x97   :  { %v1319_v40 = vpack.c.bf16 %v408_v37, %v405_v35 }
  0x99   :  { %1236 = vmatpush1.bf16.msra.mxu0 %v1235_v42  ;;  %v459_v42 = vld [vmem:[#allocation4 + $0x2b0] sm:$0xff] }
 0x145   :  { %v209_v51 = vpop.f32.mrb[0].mxu1 }
 0x146   :  { %v1752_v52 = vadd.f32 %v209_v51, %v122_v47  ;;  %v211_v53 = vpop.f32.mrb[1].mxu1  ;;  %v1303_v47 = vpack.c.bf16 %v384_v45, %v381_v43  ;;  %v437_v51 = vld [vmem:[#allocation4 + $0x200] sm:$0xff]  ;;  %v462_v43 = vld [vmem:[#allocation4 + $0x2c8] sm:$0xff] }
 0x147   :  { %v1755_v55 = vadd.f32 %v211_v53, %v126_v49  ;;  %v434_v49 = vld [vmem:[#allocation4 + $0x1e8] sm:$0xff]  ;;  %v435_v53 = vld [vmem:[#allocation4 + $0x1f0] sm:$0xff]  ;;  %v457_v45 = vld [vmem:[#allocation4 + $0x2a0] sm:$0xff] }
 0x148   :  { %v294_v57 = vmul.f32 %v1752_v52, %v1752_v52  ;;  %1304 = vmatpush3.bf16.msra.mxu1 %v1303_v47  ;;  %v1321_v47 = vpack.c.bf16 %v462_v43, %v459_v42  ;;  %v476_v42 = vld [vmem:[#allocation4 + $0x338] sm:$0xff]  ;;  %v479_v43 = vld [vmem:[#allocation4 + $0x350] sm:$0xff] }
 0x149   :  { %v295_v58 = vmul.f32 %v1755_v55, %v1755_v55  ;;  %v280_v59 = vpop.f32.mrb[2].mxu1  ;;  %v287_v60 = vadd.f32 %v1755_v55, %v1752_v52 }
 0x14a   :  { %v1764_v61 = vadd.f32 %v280_v59, %v130_v54  ;;  %v282_v62 = vpop.f32.mrb[3].mxu1  ;;  %v1237_v54 = vpack.c.bf16 %v437_v51, %v434_v49  ;;  %v460_v49 = vld [vmem:[#allocation4 + $0x2b8] sm:$0xff]  ;;  %v411_v51 = vld [vmem:[#allocation4 + $0x130] sm:$0xff] }
 0x14b   :  { %v1766_v63 = vadd.f32 %v282_v62, %v134_v56  ;;  %v298_v1 = vadd.f32 %v295_v58, %v294_v57  ;;  %v438_v56 = vld [vmem:[#allocation4 + $0x208] sm:$0xff]  ;;  %v433_v57 = vld [vmem:[#allocation4 + $0x1e0] sm:$0xff]  ;;  %v436_v58 = vld [vmem:[#allocation4 + $0x1f8] sm:$0xff] }
 0x14c   :  { %v296_v2 = vmul.f32 %v1764_v61, %v1764_v61  ;;  %v288_v3 = vadd.f32 %v287_v60, %v1764_v61  ;;  %v1305_v59 = vpack.c.bf16 %v438_v56, %v435_v53  ;;  %v1239_v60 = vpack.c.bf16 %v436_v58, %v433_v57  ;;  %v387_v62 = vld [vmem:[#allocation4 + $0x70] sm:$0xff]  ;;  %1238 = vmatprep.subr.bf16.mxu0 %v1237_v54  ;;  %v414_v53 = vld [vmem:[#allocation4 + $0x148] sm:$0xff]  ;;  %v464_v56 = vld [vmem:[#allocation4 + $0x2d8] sm:$0xff] }
 0x14d   :  { %v290_v4 = vsel %vm289_vm1, %v1766_v63, 0.0  ;;  %v297_v5 = vmul.f32 %v1766_v63, %v1766_v63  ;;  %v1255_v54 = vpack.c.bf16 %v460_v49, %v457_v45  ;;  %v467_v57 = vld [vmem:[#allocation4 + $0x2f0] sm:$0xff]  ;;  %v465_v58 = vld [vmem:[#allocation4 + $0x2e0] sm:$0xff]  ;;  %v1263_v45 = vpack.c.bf16 %v472_v39, %v469_v38  ;;  %v504_v38 = vld [vmem:[#allocation4 + $0x418] sm:$0xff] }
 0x14e   :  { %v291_v6 = vadd.f32 %v290_v4, %v288_v3  ;;  %v299_v7 = vadd.f32 %v298_v1, %v296_v2  ;;  %v390_v1 = vld [vmem:[#allocation4 + $0x88] sm:$0xff]  ;;  %1306 = vmatprep.subr.bf16.mxu1 %v1305_v59  ;;  %1240 = vmatpush1.bf16.msra.mxu0 %v1239_v60  ;;  %v440_v3 = vld [vmem:[#allocation4 + $0x218] sm:$0xff]  ;;  %v443_v4 = vld [vmem:[#allocation4 + $0x230] sm:$0xff]  ;;  %v1323_v59 = vpack.c.bf16 %v414_v53, %v411_v51 }
 0x14f   :  { %v300_v8 = vsel %vm289_vm1, %v297_v5, 0.0  ;;  %v1307_v2 = vpack.c.bf16 %v390_v1, %v387_v62  ;;  %v441_v5 = vld [vmem:[#allocation4 + $0x220] sm:$0xff]  ;;  %v1257_v60 = vpack.c.bf16 %v467_v57, %v464_v56  ;;  %v468_v62 = vld [vmem:[#allocation4 + $0x2f8] sm:$0xff]  ;;  %v463_v1 = vld [vmem:[#allocation4 + $0x2d0] sm:$0xff]  ;;  %v1265_v57 = vpack.c.bf16 %v479_v43, %v476_v42 }
 0x150   :  { %292 = vadd.xlane.f32.xlu0 %v291_v6  ;;  %v301_v9 = vadd.f32 %v300_v8, %v299_v7  ;;  %v1241_v6 = vpack.c.bf16 %v443_v4, %v440_v3  ;;  %v444_v7 = vld [vmem:[#allocation4 + $0x238] sm:$0xff]  ;;  %v439_v8 = vld [vmem:[#allocation4 + $0x210] sm:$0xff]  ;;  %v1325_v3 = vpack.c.bf16 %v468_v62, %v465_v58  ;;  %v417_v4 = vld [vmem:[#allocation4 + $0x160] sm:$0xff]  ;;  %v356_v39 = vrot.slane %v1786_v21, %v1747_v48 }
 0x151   :  { %1308 = vmatpush3.bf16.msra.mxu1 %v1307_v2  ;;  %v1309_v10 = vpack.c.bf16 %v444_v7, %v441_v5  ;;  %v466_v2 = vld [vmem:[#allocation4 + $0x2e8] sm:$0xff]  ;;  %v420_v5 = vld [vmem:[#allocation4 + $0x178] sm:$0xff]  ;;  %v475_v49 = vld [vmem:[#allocation4 + $0x330] sm:$0xff] }
 0x152   :  { %1242 = vmatprep.subr.bf16.mxu0 %v1241_v6  ;;  %v1259_v6 = vpack.c.bf16 %v466_v2, %v463_v1  ;;  %v1327_v7 = vpack.c.bf16 %v420_v5, %v417_v4  ;;  %v477_v53 = vld [vmem:[#allocation4 + $0x340] sm:$0xff]  ;;  %v482_v58 = vld [vmem:[#allocation4 + $0x368] sm:$0xff]  ;;  %v484_v4 = vld [vmem:[#allocation4 + $0x378] sm:$0xff] }
 0x153   :  { %1310 = vmatprep.subr.bf16.mxu1 %v1309_v10  ;;  %v481_v2 = vld [vmem:[#allocation4 + $0x360] sm:$0xff]  ;;  %v483_v5 = vld [vmem:[#allocation4 + $0x370] sm:$0xff]  ;;  %v508_v43 = vld [vmem:[#allocation4 + $0x438] sm:$0xff] }
 0x154   :  { %302 = vadd.xlane.f32.xlu0 %v301_v9  ;;  %v442_v9 = vld [vmem:[#allocation4 + $0x228] sm:$0xff] }
 0x155   :  { %v1243_v11 = vpack.c.bf16 %v442_v9, %v439_v8  ;;  %1312 = vmatpush3.bf16.msra.mxu1 %v1311_v14  ;;  %v470_v8 = vld [vmem:[#allocation4 + $0x308] sm:$0xff]  ;;  %v473_v9 = vld [vmem:[#allocation4 + $0x320] sm:$0xff] }
 0x156   :  { %1314 = vmatprep.subr.bf16.mxu1 %v1313_v22  ;;  %v1261_v10 = vpack.c.bf16 %v473_v9, %v470_v8  ;;  %v323_v22 = vrot.slane %v1784_v20, %v1739_v44  ;;  %v491_v8 = vld [vmem:[#allocation4 + $0x3b0] sm:$0xff]  ;;  %v1271_v9 = vpack.c.bf16 %v484_v4, %v481_v2 }
 0x157   :  { %1244 = vmatpush1.bf16.msra.mxu0 %v1243_v11  ;;  %v1587_v11 = vmov 0.0|0.0  }
 0x158   :  { %1246 = vmatprep.subr.bf16.mxu0 %v1245_v18 }
 0x159   :  { %1316 = vmatpush3.bf16.msra.mxu1 %v1315_v27  ;;  %v327_v27 = vrot.slane %v1784_v20, %v1744_v46 }
 0x15a   :  { %1318 = vmatprep.subr.bf16.mxu1 %v1317_v32 }
 0x15b   :  { %1248 = vmatpush1.bf16.msra.mxu0 %v1247_v23  ;;  %v335_v23 = vrot.slane %v1784_v20, %v1750_v50 }
 0x15c   :  { %1250 = vmatprep.subr.bf16.mxu0 %v1249_v31 }
 0x15d   :  { %1320 = vmatpush3.bf16.msra.mxu1 %v1319_v40  ;;  %v471_v40 = vld [vmem:[#allocation4 + $0x310] sm:$0xff] }
 0x15e   :  { %1322 = vmatprep.subr.bf16.mxu1 %v1321_v47 }
 0x15f   :  { %1252 = vmatpush1.bf16.msra.mxu0 %v1251_v36 }
 0x160   :  { %1254 = vmatprep.subr.bf16.mxu0 %v1253_v41  ;;  %v474_v41 = vld [vmem:[#allocation4 + $0x328] sm:$0xff] }
 0x161   :  { %1324 = vmatpush3.bf16.msra.mxu1 %v1323_v59  ;;  %v1330_v47 = vpack.c.bf16 %v474_v41, %v471_v40  ;;  %v485_v59 = vld [vmem:[#allocation4 + $0x380] sm:$0xff] }
 0x162   :  { %1326 = vmatprep.subr.bf16.mxu1 %v1325_v3  ;;  %v1269_v3 = vpack.c.bf16 %v485_v59, %v482_v58  ;;  %v505_v40 = vld [vmem:[#allocation4 + $0x420] sm:$0xff]  ;;  %v516_v59 = vld [vmem:[#allocation4 + $0x478] sm:$0xff] }
 0x163   :  { %1256 = vmatpush1.bf16.msra.mxu0 %v1255_v54  ;;  %v480_v54 = vld [vmem:[#allocation4 + $0x358] sm:$0xff]  ;;  %v513_v58 = vld [vmem:[#allocation4 + $0x460] sm:$0xff] }
 0x164   :  { %1258 = vmatprep.subr.bf16.mxu0 %v1257_v60  ;;  %v1333_v1 = vpack.c.bf16 %v480_v54, %v477_v53  ;;  %v1351_v2 = vpack.c.bf16 %v516_v59, %v513_v58  ;;  %v901_v58 = vld [vmem:[#allocation10 + $0x30] sm:$0xff]  ;;  %v902_v59 = vld [vmem:[#allocation10 + $0x38] sm:$0xff] }
 0x165   :  { %1328 = vmatpush3.bf16.msra.mxu1 %v1327_v7  ;;  %v488_v7 = vld [vmem:[#allocation4 + $0x398] sm:$0xff] }
 0x166   :  { %1329 = vmatprep.subr.bf16.mxu1 %v1587_v11 }
 0x167   :  { %1260 = vmatpush1.bf16.msra.mxu0 %v1259_v6  ;;  %v486_v6 = vld [vmem:[#allocation4 + $0x388] sm:$0xff] }
 0x168   :  { %1262 = vmatprep.subr.bf16.mxu0 %v1261_v10  ;;  %v1336_v10 = vpack.c.bf16 %v486_v6, %v483_v5  ;;  %v520_v5 = vld [vmem:[#allocation4 + $0x498] sm:$0xff]  ;;  %v519_v6 = vld [vmem:[#allocation4 + $0x490] sm:$0xff] }
 0x1dd   :  { %v293_v12 = vpop.xlane.xlu0 %292 }
 0x1de   :  { %v1777_v13 = vmul.f32 0.0025, %v293_v12  ;;  %v487_v12 = vld [vmem:[#allocation4 + $0x390] sm:$0xff] }
 0x1e0   :  { %v306_v15 = vmul.f32 %v1777_v13, %v1777_v13  ;;  %v309_v24 = vsub.f32 %v1752_v52, %v1777_v13  ;;  %v310_v25 = vsub.f32 %v1755_v55, %v1777_v13  ;;  %v312_v26 = vsub.f32 %v1766_v63, %v1777_v13 }
 0x1e1   :  { %v303_v14 = vpop.xlane.xlu0 %302  ;;  %v352_v52 = vrot.slane %v1786_v21, %v1744_v46  ;;  %v360_v63 = vrot.slane %v1786_v21, %v1750_v50  ;;  %v478_v50 = vld [vmem:[#allocation4 + $0x348] sm:$0xff]  ;;  %v511_v21 = vld [vmem:[#allocation4 + $0x450] sm:$0xff] }
 0x1e2   :  { %v305_v16 = vmul.f32 0.0025, %v303_v14  ;;  %v1267_v62 = vpack.c.bf16 %v478_v50, %v475_v49  ;;  %v1273_v14 = vpack.c.bf16 %v491_v8, %v488_v7  ;;  %v512_v49 = vld [vmem:[#allocation4 + $0x458] sm:$0xff]  ;;  %v1287_v50 = vpack.c.bf16 %v508_v43, %v505_v40  ;;  %v522_v7 = vld [vmem:[#allocation4 + $0x4a8] sm:$0xff] }
 0x1e3   :  { %v914_v40 = vld [vmem:[#allocation10 + $0x98] sm:$0xff] }
 0x1e4   :  { %v307_v17 = vsub.f32 %v305_v16, %v306_v15  ;;  %v490_v15 = vld [vmem:[#allocation4 + $0x3a8] sm:$0xff]  ;;  %v489_v16 = vld [vmem:[#allocation4 + $0x3a0] sm:$0xff]  ;;  %v898_v43 = vld [vmem:[#allocation10 + $0x18] sm:$0xff] }
 0x1e6   :  { %v308_v18 = vmax.f32 %v307_v17, 0.0  ;;  %v492_v17 = vld [vmem:[#allocation4 + $0x3b8] sm:$0xff] }
 0x1e8   :  { %v313_v19 = vadd.f32 1e-05, %v308_v18  ;;  %v494_v18 = vld [vmem:[#allocation4 + $0x3c8] sm:$0xff] }
 0x1ea   :  { %1416 = vrsqrt.f32 %v313_v19  ;;  %v497_v19 = vld [vmem:[#allocation4 + $0x3e0] sm:$0xff] }
 0x1f4   :  { %v1800_v28 = vpop.eup %1416 }
 0x1f5   :  { %v318_v30 = vmul.f32 %v1800_v28, %v312_v26  ;;  %v316_v31 = vmul.f32 %v1800_v28, %v310_v25  ;;  %v315_v55 = vmul.f32 %v1800_v28, %v309_v24  ;;  %v493_v24 = vld [vmem:[#allocation4 + $0x3c0] sm:$0xff]  ;;  %v1277_v25 = vpack.c.bf16 %v497_v19, %v494_v18  ;;  %v496_v26 = vld [vmem:[#allocation4 + $0x3d8] sm:$0xff] }
 0x1f7   :  { %v341_v32 = vmul.f32 %v327_v27, %v316_v31  ;;  %v340_v33 = vmul.f32 %v323_v22, %v315_v55  ;;  %v343_v34 = vmul.f32 %v335_v23, %v318_v30  ;;  %v1275_v22 = vpack.c.bf16 %v490_v15, %v487_v12  ;;  %v495_v27 = vld [vmem:[#allocation4 + $0x3d0] sm:$0xff]  ;;  %v500_v31 = vld [vmem:[#allocation4 + $0x3f8] sm:$0xff] }
 0x1f8   :  { %v1339_v23 = vpack.c.bf16 %v492_v17, %v489_v16  ;;  %v311_v30 = vsub.f32 %v1764_v61, %v1777_v13  ;;  %v331_v55 = vrot.slane %v1784_v20, %v1747_v48  ;;  %v506_v61 = vld [vmem:[#allocation4 + $0x428] sm:$0xff]  ;;  %v509_v13 = vld [vmem:[#allocation4 + $0x440] sm:$0xff]  ;;  %v523_v16 = vld [vmem:[#allocation6] sm:$0x7] }
 0x1f9   :  { %v366_v35 = vadd.f32 %v352_v52, %v341_v32  ;;  %v365_v36 = vadd.f32 %v348_v29, %v340_v33  ;;  %v368_v37 = vadd.f32 %v360_v63, %v343_v34  ;;  %v498_v29 = vld [vmem:[#allocation4 + $0x3e8] sm:$0xff]  ;;  %v503_v52 = vld [vmem:[#allocation4 + $0x410] sm:$0xff]  ;;  %v1279_v32 = vpack.c.bf16 %v496_v26, %v493_v24 }
 0x1fa   :  { %v317_v63 = vmul.f32 %v1800_v28, %v311_v30  ;;  %v1342_v33 = vpack.c.bf16 %v498_v29, %v495_v27  ;;  %v499_v34 = vld [vmem:[#allocation4 + $0x3f0] sm:$0xff]  ;;  %v1285_v42 = vpack.c.bf16 %v509_v13, %v506_v61  ;;  %v536_v17 = vrot.slane %v523_v16, %v1747_v48  ;;  %v895_v13 = vld [vmem:[#allocation10] sm:$0xff] }
 0x1fb   :  { %1418 = vtanh.f32 %v366_v35  ;;  %v1281_v35 = vpack.c.bf16 %v503_v52, %v500_v31  ;;  %v528_v18 = vrot.slane %v523_v16, %v1739_v44  ;;  %v532_v19 = vrot.slane %v523_v16, %v1744_v46  ;;  %v923_v16 = vld [vmem:[#allocation10 + $0xe0] sm:$0xff] }
 0x1fc   :  { %1420 = vtanh.f32 %v365_v36  ;;  %v502_v36 = vld [vmem:[#allocation4 + $0x408] sm:$0xff]  ;;  %v342_v41 = vmul.f32 %v331_v55, %v317_v63 }
 0x1fd   :  { %1422 = vtanh.f32 %v368_v37  ;;  %v501_v37 = vld [vmem:[#allocation4 + $0x400] sm:$0xff]  ;;  %v1283_v20 = vpack.c.bf16 %v502_v36, %v499_v34 }
 0x1fe   :  { %v1345_v28 = vpack.c.bf16 %v504_v38, %v501_v37  ;;  %v367_v54 = vadd.f32 %v356_v39, %v342_v41  ;;  %v911_v37 = vld [vmem:[#allocation10 + $0x80] sm:$0xff]  ;;  %v912_v38 = vld [vmem:[#allocation10 + $0x88] sm:$0xff] }
 0x1ff   :  { %v1356_v61 = vpack.c.bf16 %v912_v38, %v911_v37  ;;  %v896_v39 = vld [vmem:[#allocation10 + $0x8] sm:$0xff] }
 0x200   :  { %1424 = vtanh.f32 %v367_v54  ;;  %v917_v54 = vld [vmem:[#allocation10 + $0xb0] sm:$0xff] }
 0x205   :  { %v1419_v51 = vpop.eup %1418 }
 0x206   :  { %v1421_v56 = vpop.eup %1420  ;;  %607 = vmatprep.mubr.f32.mxu0 %v1419_v51  ;;  %749 = vmatprep.mubr.f32.mxu1 %v1419_v51  ;;  %v515_v51 = vld [vmem:[#allocation4 + $0x470] sm:$0xff] }
 0x207   :  { %608 = vmatmul.mubr.f32.vlgmr.msra.gmra.mrb[0].mxu0 %v1421_v56  ;;  %750 = vmatmul.mubr.f32.vlgmr.msra.gmra.mrb[4].mxu1 %v1421_v56  ;;  %v1423_v60 = vpop.eup %1422  ;;  %v1289_v56 = vpack.c.bf16 %v515_v51, %v512_v49  ;;  %v916_v49 = vld [vmem:[#allocation10 + $0xa8] sm:$0xff] }
 0x208   :  { %1264 = vmatpush1.bf16.msra.mxu0 %v1263_v45  ;;  %1331 = vmatpush1.bf16.msra.mxu1 %v1330_v47  ;;  %v507_v45 = vld [vmem:[#allocation4 + $0x430] sm:$0xff]  ;;  %v510_v47 = vld [vmem:[#allocation4 + $0x448] sm:$0xff] }
 0x209   :  { %1100 = vmatprep.mubr.msk.f32.mxu0 %vm289_vm1, %v1423_v60  ;;  %1101 = vmatprep.mubr.msk.f32.mxu1 %vm289_vm1, %v1423_v60  ;;  %v1348_v53 = vpack.c.bf16 %v510_v47, %v507_v45  ;;  %v518_v60 = vld [vmem:[#allocation4 + $0x488] sm:$0xff]  ;;  %v915_v47 = vld [vmem:[#allocation10 + $0xa0] sm:$0xff] }
 0x20a   :  { %1266 = vmatprep.subr.bf16.mxu0 %v1265_v57  ;;  %1332 = vmatprep.subr.bf16.mxu1 %v1587_v11  ;;  %v514_v57 = vld [vmem:[#allocation4 + $0x468] sm:$0xff]  ;;  %v1364_v51 = vpack.c.bf16 %v916_v49, %v915_v47 }
 0x20c   :  { %1268 = vmatpush1.bf16.msra.mxu0 %v1267_v62  ;;  %1334 = vmatpush1.bf16.msra.mxu1 %v1333_v1  ;;  %v521_v62 = vld [vmem:[#allocation4 + $0x4a0] sm:$0xff]  ;;  %v1291_v1 = vpack.c.bf16 %v514_v57, %v511_v21 }
 0x20d   :  { %1270 = vmatprep.subr.bf16.mxu0 %v1269_v3  ;;  %1335 = vmatprep.subr.bf16.mxu1 %v1587_v11  ;;  %v517_v3 = vld [vmem:[#allocation4 + $0x480] sm:$0xff]  ;;  %v1293_v4 = vpack.c.bf16 %v521_v62, %v518_v60  ;;  %v1370_v60 = vpack.c.bf16 %v902_v59, %v901_v58 }
 0x20e   :  { %v1295_v8 = vpack.c.bf16 %v520_v5, %v517_v3  ;;  %v919_v62 = vld [vmem:[#allocation10 + $0xc0] sm:$0xff]  ;;  %v921_v5 = vld [vmem:[#allocation10 + $0xd0] sm:$0xff] }
 0x20f   :  { %v903_v3 = vld [vmem:[#allocation10 + $0x40] sm:$0xff] }
 0x210   :  { %1272 = vmatpush1.bf16.msra.mxu0 %v1271_v9  ;;  %1337 = vmatpush1.bf16.msra.mxu1 %v1336_v10  ;;  %v1354_v9 = vpack.c.bf16 %v522_v7, %v519_v6  ;;  %v1425_v10 = vpop.eup %1424  ;;  %v922_v7 = vld [vmem:[#allocation10 + $0xd8] sm:$0xff] }
 0x211   :  { %1274 = vmatprep.subr.bf16.mxu0 %v1273_v14  ;;  %1338 = vmatprep.subr.bf16.mxu1 %v1587_v11 }
 0x214   :  { %1276 = vmatpush1.bf16.msra.mxu0 %v1275_v22  ;;  %1340 = vmatpush1.bf16.msra.mxu1 %v1339_v23 }
 0x215   :  { %1278 = vmatprep.subr.bf16.mxu0 %v1277_v25  ;;  %1341 = vmatprep.subr.bf16.mxu1 %v1587_v11 }
 0x218   :  { %1280 = vmatpush1.bf16.msra.mxu0 %v1279_v32  ;;  %1343 = vmatpush1.bf16.msra.mxu1 %v1342_v33 }
 0x219   :  { %1282 = vmatprep.subr.bf16.mxu0 %v1281_v35  ;;  %1344 = vmatprep.subr.bf16.mxu1 %v1587_v11 }
 0x21c   :  { %1284 = vmatpush1.bf16.msra.mxu0 %v1283_v20  ;;  %1346 = vmatpush1.bf16.msra.mxu1 %v1345_v28  ;;  %v1358_v20 = vpack.c.bf16 %v896_v39, %v895_v13  ;;  %v913_v28 = vld [vmem:[#allocation10 + $0x90] sm:$0xff] }
 0x21d   :  { %1286 = vmatprep.subr.bf16.mxu0 %v1285_v42  ;;  %1347 = vmatprep.subr.bf16.mxu1 %v1587_v11  ;;  %v1360_v41 = vpack.c.bf16 %v914_v40, %v913_v28  ;;  %v897_v42 = vld [vmem:[#allocation10 + $0x10] sm:$0xff] }
 0x21e   :  { %v1362_v45 = vpack.c.bf16 %v898_v43, %v897_v42  ;;  %v826_v42 = vld [vmem:[#allocation9] sm:$0x7] }
 0x21f   :  { %v885_v58 = vrot.slane %v826_v42, %v1747_v48 }
 0x220   :  { %1288 = vmatpush1.bf16.msra.mxu0 %v1287_v50  ;;  %1349 = vmatpush1.bf16.msra.mxu1 %v1348_v53  ;;  %v899_v50 = vld [vmem:[#allocation10 + $0x20] sm:$0xff]  ;;  %v900_v53 = vld [vmem:[#allocation10 + $0x28] sm:$0xff] }
 0x221   :  { %1290 = vmatprep.subr.bf16.mxu0 %v1289_v56  ;;  %1350 = vmatprep.subr.bf16.mxu1 %v1587_v11  ;;  %v1366_v21 = vpack.c.bf16 %v900_v53, %v899_v50  ;;  %v918_v56 = vld [vmem:[#allocation10 + $0xb8] sm:$0xff]  ;;  %v877_v53 = vrot.slane %v826_v42, %v1739_v44 }
 0x222   :  { %v1368_v57 = vpack.c.bf16 %v918_v56, %v917_v54 }
 0x224   :  { %1292 = vmatpush1.bf16.msra.mxu0 %v1291_v1  ;;  %1352 = vmatpush1.bf16.msra.mxu1 %v1351_v2  ;;  %v920_v1 = vld [vmem:[#allocation10 + $0xc8] sm:$0xff] }
 0x225   :  { %1294 = vmatprep.subr.bf16.mxu0 %v1293_v4  ;;  %1353 = vmatprep.subr.bf16.mxu1 %v1587_v11  ;;  %v1372_v2 = vpack.c.bf16 %v920_v1, %v919_v62  ;;  %v904_v4 = vld [vmem:[#allocation10 + $0x48] sm:$0xff] }
 0x226   :  { %v1374_v6 = vpack.c.bf16 %v904_v4, %v903_v3 }
 0x228   :  { %1296 = vmatpush1.bf16.msra.mxu0 %v1295_v8  ;;  %1355 = vmatpush1.bf16.msra.mxu1 %v1354_v9  ;;  %v927_v8 = vld [vmem:[#allocation10 + $0x100] sm:$0xff]  ;;  %v928_v9 = vld [vmem:[#allocation10 + $0x108] sm:$0xff] }
 0x229   :  { %1388 = vmatprep.subr.bf16.mxu0 %v1587_v11  ;;  %1357 = vmatprep.subr.bf16.mxu1 %v1356_v61 }
 0x22b   :  { %679 = vmatmul.mubr.f32.vlgmr.msra.gmra.mrb[0].mxu0 %v1425_v10  ;;  %820 = vmatmul.mubr.f32.vlgmr.msra.gmra.mrb[6].mxu1 %v1425_v10  ;;  %v1376_v10 = vpack.c.bf16 %v922_v7, %v921_v5 }
 0x22c   :  { %1359 = vmatpush3.bf16.msra.mxu1 %v1358_v20  ;;  %1194 = vmatprep.mubr.msk.f32.mxu0 %vm1588_vm3, %v1586_v0  ;;  %v926_v0 = vld [vmem:[#allocation10 + $0xf8] sm:$0xff] }
 0x22d   :  { %1361 = vmatprep.subr.bf16.mxu1 %v1360_v41  ;;  %v825_v41 = vld [vmem:[#allocation7] sm:$0x7] }
 0x22e   :  { %v866_v43 = vrot.slane %v825_v41, %v1747_v48  ;;  %v1102_v48 = vld [vmem:[%s1878_s10] ss:$0 sm:$0xff] }
 0x230   :  { %1363 = vmatpush3.bf16.msra.mxu1 %v1362_v45 }
 0x231   :  { %1365 = vmatprep.subr.bf16.mxu1 %v1364_v51  ;;  %v862_v51 = vrot.slane %v825_v41, %v1744_v46 }
 0x234   :  { %1367 = vmatpush3.bf16.msra.mxu1 %v1366_v21  ;;  %v881_v21 = vrot.slane %v826_v42, %v1744_v46 }
 0x235   :  { %1369 = vmatprep.subr.bf16.mxu1 %v1368_v57 }
 0x238   :  { %1371 = vmatpush3.bf16.msra.mxu1 %v1370_v60 }
 0x239   :  { %1373 = vmatprep.subr.bf16.mxu1 %v1372_v2 }
 0x23c   :  { %1375 = vmatpush3.bf16.msra.mxu1 %v1374_v6 }
 0x23d   :  { %1377 = vmatprep.subr.bf16.mxu1 %v1376_v10 }
 0x2da   :  { %v1137_v12 = vpop.f32.mrb[4].mxu1 }
 0x2db   :  { %v1138_v14 = vpop.f32.mrb[5].mxu1 }
 0x2dc   :  { %v1139_v15 = vadd.f32 %v1138_v14, %v1137_v12  ;;  %v1389_v12 = vpack.c.bf16 %v928_v9, %v927_v8  ;;  %v905_v14 = vld [vmem:[#allocation10 + $0x50] sm:$0xff] }
 0x2de   :  { %v752_v22 = vadd.f32 %v1139_v15, %v536_v17  ;;  %v906_v15 = vld [vmem:[#allocation10 + $0x58] sm:$0xff]  ;;  %1390 = vmatpush3.bf16.msra.mxu0 %v1389_v12 }
 0x2df   :  { %v1378_v17 = vpack.c.bf16 %v906_v15, %v905_v14  ;;  %1391 = vmatprep.subr.bf16.mxu0 %v1587_v11 }
 0x2e1   :  { %1379 = vmatpush3.bf16.msra.mxu1 %v1378_v17 }
 0x2fe   :  { %v680_v23 = vpop.f32.mrb[0].mxu0  ;;  %v821_v24 = vpop.f32.mrb[6].mxu1 }
 0x2ff   :  { %v1832_v25 = vadd.f32 %v680_v23, %v528_v18  ;;  %v1834_v26 = vadd.f32 %v821_v24, %v752_v22  ;;  %v682_v27 = vpop.f32.mrb[1].mxu0  ;;  %v823_v29 = vpop.f32.mrb[7].mxu1  ;;  %v924_v18 = vld [vmem:[#allocation10 + $0xe8] sm:$0xff]  ;;  %v930_v22 = vld [vmem:[#allocation10 + $0x118] sm:$0xff] }
 0x300   :  { %v1836_v30 = vadd.f32 %v682_v27, %v532_v19  ;;  %v929_v19 = vld [vmem:[#allocation10 + $0x110] sm:$0xff]  ;;  %v1380_v23 = vpack.c.bf16 %v924_v18, %v923_v16  ;;  %v907_v27 = vld [vmem:[#allocation10 + $0x60] sm:$0xff]  ;;  %v908_v29 = vld [vmem:[#allocation10 + $0x68] sm:$0xff] }
 0x301   :  { %v833_v31 = vmul.f32 %v1832_v25, %v1832_v25  ;;  %v829_v63 = vsel %vm828_vm2, %v1834_v26, 0.0  ;;  %v835_v32 = vmul.f32 %v1834_v26, %v1834_v26  ;;  %v1392_v24 = vpack.c.bf16 %v930_v22, %v929_v19 }
 0x302   :  { %v834_v52 = vmul.f32 %v1836_v30, %v1836_v30  ;;  %v827_v55 = vadd.f32 %v1836_v30, %v1832_v25  ;;  %1381 = vmatprep.subr.bf16.mxu1 %v1380_v23 }
 0x303   :  { %v837_v35 = vsel %vm828_vm2, %v835_v32, 0.0  ;;  %1393 = vmatpush3.bf16.msra.mxu0 %v1392_v24 }
 0x304   :  { %v830_v33 = vadd.f32 %v829_v63, %v827_v55  ;;  %v836_v34 = vadd.f32 %v834_v52, %v833_v31  ;;  %v925_v31 = vld [vmem:[#allocation10 + $0xf0] sm:$0xff]  ;;  %v931_v52 = vld [vmem:[#allocation10 + $0x120] sm:$0xff]  ;;  %v932_v55 = vld [vmem:[#allocation10 + $0x128] sm:$0xf]  ;;  %v1382_v63 = vpack.c.bf16 %v908_v29, %v907_v27  ;;  %1394 = vmatprep.subr.bf16.mxu0 %v1587_v11  ;;  %v858_v11 = vrot.slane %v825_v41, %v1739_v44 }
 0x305   :  { %v1384_v32 = vpack.c.bf16 %v926_v0, %v925_v31 }
 0x306   :  { %831 = vadd.xlane.f32.xlu1 %v830_v33  ;;  %v838_v36 = vadd.f32 %v837_v35, %v836_v34  ;;  %v1395_v33 = vpack.c.bf16 %v932_v55, %v931_v52  ;;  %v909_v34 = vld [vmem:[#allocation10 + $0x70] sm:$0xff]  ;;  %v910_v35 = vld [vmem:[#allocation10 + $0x78] sm:$0xff]  ;;  %1383 = vmatpush3.bf16.msra.mxu1 %v1382_v63 }
 0x307   :  { %1385 = vmatprep.subr.bf16.mxu1 %v1384_v32 }
 0x308   :  { %1397 = vmatpush3.bf16.msk.msra.mxu0 %vm1396_vm6, %v1395_v33 }
 0x30a   :  { %839 = vadd.xlane.f32.xlu1 %v838_v36  ;;  %v1386_v36 = vpack.c.bf16 %v910_v35, %v909_v34 }
 0x30c   :  { %1387 = vmatpush3.bf16.msra.mxu1 %v1386_v36 }
 0x393   :  { %v832_v37 = vpop.xlane.xlu1 %831 }
 0x394   :  { %v841_v38 = vmul.f32 0.0033333334, %v832_v37 }
 0x396   :  { %v843_v13 = vmul.f32 %v841_v38, %v841_v38  ;;  %v846_v45 = vsub.f32 %v1832_v25, %v841_v38  ;;  %v847_v47 = vsub.f32 %v1836_v30, %v841_v38  ;;  %v848_v49 = vsub.f32 %v1834_v26, %v841_v38 }
 0x397   :  { %v840_v61 = vpop.xlane.xlu1 %839 }
 0x398   :  { %v842_v39 = vmul.f32 0.0033333334, %v840_v61 }
 0x39a   :  { %v844_v20 = vsub.f32 %v842_v39, %v843_v13 }
 0x39c   :  { %v845_v28 = vmax.f32 %v844_v20, 0.0 }
 0x39e   :  { %v849_v40 = vadd.f32 1e-05, %v845_v28 }
 0x3a0   :  { %1426 = vrsqrt.f32 %v849_v40 }
 0x3aa   :  { %v1427_v50 = vpop.eup %1426 }
 0x3ab   :  { %v851_v54 = vmul.f32 %v1427_v50, %v846_v45  ;;  %v852_v56 = vmul.f32 %v1427_v50, %v847_v47  ;;  %v853_v57 = vmul.f32 %v1427_v50, %v848_v49 }
 0x3ad   :  { %v870_v59 = vmul.f32 %v858_v11, %v851_v54  ;;  %v872_v60 = vmul.f32 %v866_v43, %v853_v57  ;;  %v871_v62 = vmul.f32 %v862_v51, %v852_v56 }
 0x3af   :  { %v889_v25 = vadd.f32 %v877_v53, %v870_v59  ;;  %v890_v1 = vadd.f32 %v881_v21, %v871_v62  ;;  %v891_v30 = vadd.f32 %v885_v58, %v872_v60 }
 0x3b1   :  { %1428 = vtanh.f32 %v889_v25 }
 0x3b2   :  { %1430 = vtanh.f32 %v890_v1 }
 0x3b3   :  { %1432 = vtanh.f32 %v891_v30 }
 0x3bb   :  { %v1429_v26 = vpop.eup %1428 }
 0x3bc   :  { %v1431_v2 = vpop.eup %1430 }
 0x3bd   :  { %v1433_v3 = vpop.eup %1432  ;;  %1011 = vmatprep.mubr.f32.mxu1 %v1431_v2 }
 0x3be   :  { %1195 = vmatmul.mubr.msk.f32.vlgmr.msra.gmra.mrb[2].mxu0 %vm828_vm2, %v1433_v3  ;;  %1012 = vmatmul.mubr.f32.vlgmr.msra.gmra.mrb[8].mxu1 %v1429_v26 }
 0x491   :  { %v1083_v44 = vpop.f32.mrb[2].mxu0  ;;  %v1172_v46 = vpop.f32.mrb[8].mxu1 }
 0x492   :  { %v1196_v4 = vpop.f32.mrb[3].mxu0  ;;  %v1173_v5 = vpop.f32.mrb[9].mxu1 }
 0x493   :  { %v1174_v6 = vadd.f32 %v1173_v5, %v1172_v46 }
 0x495   :  { %v1014_v7 = vadd.f32 %v1174_v6, %v1102_v48 }
 0x497   :  { %v1084_v8 = vadd.f32 %v1083_v44, %v1014_v7 }
 0x499   :  { %1434 = vtanh.f32 %v1084_v8 }
 0x4a3   :  { %v1435_v9 = vpop.eup %1434 }
 0x4a4   :  { %v1088_v10 = vmul.f32 2.0, %v1435_v9 }
 0x4a6   :  { %1089 = vst [vmem:[%s1879_s11] sm:$0xff] %v1088_v10 }
 0x4a7   :  { %1094 = vsyncpa [#allocation3], 1 }
 0x4a8   :  { %1095 = vsyncpa [#allocation5], 1 }
 0x4a9   :  { %1096 = vsyncpa [#allocation8], 1 }
 0x4aa   :  { %1097 = vsyncpa [#allocation11], 1 }

</bundles_post_ra>
